<compile_context>
chip_gen: v5e
topology: v5e:2x2
jax: 0.10.0
libtpu: 0.0.40
codegen_flags: <defaults>
</compile_context>

<pallas_src>
import jax
import jax.numpy as jnp
from jax import lax
from jax.experimental import pallas as pl
from jax.experimental.pallas import tpu as pltpu


def _round_up(x, m):
    return (x + m - 1) // m * m


def _cdiv(a, b):
    return -(-a // b)


# --------------------------------------------------------------------------
# Relation branch kernel (tiled over Nr): softmax, masked max/argmax over
# classes 1:, triple score, packed into one lane-dense [br, cr_pad] slab:
#   lanes [0, Cr)    : rel_class_prob
#   lane  cr_pad - 2 : rel_class (as f32; exact for class idx < 2^24)
#   lane  cr_pad - 1 : triple_score
# --------------------------------------------------------------------------
def _rel_kernel(rel_logit_ref, s01_ref, out_ref):
    x = rel_logit_ref[...].astype(jnp.float32)            # [br, Cr]
    br, cr = x.shape
    cr_pad = out_ref.shape[-1]

    # Softmax in f32; reciprocal*multiply instead of per-element divide
    # (exact reciprocal -> argmax/tie behaviour unchanged).
    m = jnp.max(x, axis=-1, keepdims=True)
    e = jnp.exp(x - m)
    p = e * pl.reciprocal(jnp.sum(e, axis=-1, keepdims=True))   # [br, Cr]

    # max / argmax over classes 1: (min-index tiebreak == torch argmax).
    col = lax.broadcasted_iota(jnp.int32, (br, cr), 1)
    pm = jnp.where(col == 0, jnp.float32(-1.0), p)
    rel_scores = jnp.max(pm, axis=-1, keepdims=True)       # [br, 1]
    rel_class = jnp.min(jnp.where(pm == rel_scores, col, cr),
                        axis=-1, keepdims=True)             # [br, 1] (already +1)

    # obj_scores[pair0] * obj_scores[pair1] gathered in the wrapper.
    triple = rel_scores * s01_ref[...]                      # [br, 1]

    # Build the lane-dense output slab in vregs and do a single full store.
    p_pad = jnp.pad(p, ((0, 0), (0, cr_pad - cr)))          # vreg work only
    colp = lax.broadcasted_iota(jnp.int32, (br, cr_pad), 1)
    out = jnp.where(colp == cr_pad - 1, triple,
                    jnp.where(colp == cr_pad - 2,
                              rel_class.astype(jnp.float32), p_pad))
    out_ref[...] = out


def post_processor(obj_logit, rel_logit, rel_pair_idx, *, block_rows=2048):
    """Pallas-backed PostProcessor forward (single image, use_gt_box=True)."""
    No, Co = obj_logit.shape
    Nr, Cr = rel_logit.shape

    # ---- object branch + pair gather: tiny (O(No*Co) / O(Nr)), plain jnp ----
    # (per perf review: a second kernel launch + transpose was pure latency).
    obj_p = jax.nn.softmax(obj_logit.astype(jnp.float32), axis=-1)
    obj_scores = jnp.max(obj_p[:, 1:], axis=-1)                  # [No]
    obj_pred = (jnp.argmax(obj_p[:, 1:], axis=-1) + 1).astype(jnp.int32)
    pair = rel_pair_idx.astype(jnp.int32)
    s01 = (jnp.take(obj_scores, pair[:, 0])
           * jnp.take(obj_scores, pair[:, 1])).astype(jnp.float32)  # [Nr]

    # ---- relation branch: tiled & pipelined over Nr ----
    cr_pad = _round_up(Cr + 2, 128)          # lane-dense output, 2 spare lanes
    n_blocks = _cdiv(Nr, block_rows)
    if Nr > 8:
        n_blocks = max(n_blocks, 2)          # v7x: >=2 steps for both TCs
    br = _round_up(_cdiv(Nr, n_blocks), 8)   # balanced blocks, multiple of 8
    nr_pad = n_blocks * br

    # Row-pad only, in the input's native dtype (no host-side f32 pass).
    if nr_pad == Nr:
        rel_logit_p = rel_logit
        s01_p = s01[:, None]
    else:
        rel_logit_p = jnp.pad(rel_logit, ((0, nr_pad - Nr), (0, 0)))
        s01_p = jnp.pad(s01, (0, nr_pad - Nr))[:, None]

    rel_out = pl.pallas_call(
        _rel_kernel,
        out_shape=jax.ShapeDtypeStruct((nr_pad, cr_pad), jnp.float32),
        grid=(n_blocks,),
        in_specs=[
            pl.BlockSpec((br, Cr), lambda r: (r, 0)),   # logits, native dtype
            pl.BlockSpec((br, 1), lambda r: (r, 0)),    # obj-score products
        ],
        out_specs=pl.BlockSpec((br, cr_pad), lambda r: (r, 0)),
        compiler_params=pltpu.CompilerParams(
            dimension_semantics=("parallel",),          # megacore on v7x
            vmem_limit_bytes=32 * 1024 * 1024),
    )(rel_logit_p, s01_p)

    # One contiguous slice for both packed scalar lanes.
    tail = rel_out[:Nr, cr_pad - 2:cr_pad]               # [Nr, 2]
    rel_class = tail[:, 0].astype(jnp.int32)
    triple = tail[:, 1]

    # torch.sort(..., descending=True) + reorder (glue, plain JAX).
    sorting_idx = jnp.argsort(-triple)
    rel_pair_idx_sorted = rel_pair_idx[sorting_idx]
    pred_rel_scores = rel_out[:Nr, :Cr][sorting_idx]
    pred_rel_labels = rel_class[sorting_idx]

    return {
        "pred_labels": obj_pred,
        "pred_scores": obj_scores,
        "rel_pair_idxs": rel_pair_idx_sorted,
        "pred_rel_scores": pred_rel_scores,
        "pred_rel_labels": pred_rel_labels,
    }


def _reference(obj_logit, rel_logit, rel_pair_idx):
    """Pure-JAX reference of the same forward semantics (sanity check)."""
    p = jax.nn.softmax(obj_logit.astype(jnp.float32), axis=-1)
    p = p.at[:, 0].set(0.0)
    obj_scores = jnp.max(p[:, 1:], axis=-1)
    obj_pred = jnp.argmax(p[:, 1:], axis=-1) + 1
    pr = jax.nn.softmax(rel_logit.astype(jnp.float32), axis=-1)
    rel_scores = jnp.max(pr[:, 1:], axis=-1)
    rel_class = jnp.argmax(pr[:, 1:], axis=-1) + 1
    s0 = obj_scores[rel_pair_idx[:, 0]]
    s1 = obj_scores[rel_pair_idx[:, 1]]
    triple = rel_scores * s0 * s1
    idx = jnp.argsort(-triple)
    return {
        "pred_labels": obj_pred.astype(jnp.int32),
        "pred_scores": obj_scores,
        "rel_pair_idxs": rel_pair_idx[idx],
        "pred_rel_scores": pr[idx],
        "pred_rel_labels": rel_class[idx].astype(jnp.int32),
    }


if __name__ == "__main__":
    key = jax.random.PRNGKey(0)
    k1, k2, k3 = jax.random.split(key, 3)

    num_obj, num_obj_classes = 8, 32
    num_rel, num_rel_classes = 16, 51   # 51 rel classes, as in the VG config

    obj_logit = jax.random.normal(k1, (num_obj, num_obj_classes), jnp.float32)
    rel_logit = jax.random.normal(k2, (num_rel, num_rel_classes), jnp.float32)
    rel_pair_idx = jax.random.randint(k3, (num_rel, 2), 0, num_obj, jnp.int32)

    out = post_processor(obj_logit, rel_logit, rel_pair_idx)
    jax.block_until_ready(out)

    ref = _reference(obj_logit, rel_logit, rel_pair_idx)
    assert jnp.allclose(out["pred_scores"], ref["pred_scores"], atol=1e-5)
    assert jnp.array_equal(out["pred_labels"], ref["pred_labels"])
    assert jnp.allclose(out["pred_rel_scores"], ref["pred_rel_scores"], atol=1e-5)
    assert jnp.array_equal(out["pred_rel_labels"], ref["pred_rel_labels"])
    assert jnp.array_equal(out["rel_pair_idxs"], ref["rel_pair_idxs"])

    print("KERNEL_OK")
</pallas_src>

<mosaic_0001>
module attributes {stable_mosaic.version = 11 : i64} {
  func.func @_rel_kernel(%arg0: i32, %arg1: memref<8x51xf32, #tpu.memory_space<vmem>>, %arg2: memref<8x1xf32, #tpu.memory_space<vmem>>, %arg3: memref<8x128xf32, #tpu.memory_space<vmem>>) attributes {dimension_semantics = [#tpu.dimension_semantics<parallel>], iteration_bounds = array<i64: 2>, scalar_prefetch = 0 : i64, scratch_operands = 0 : i64, tpu.core_type = #tpu.core_type<tc>, window_params = [{transform_indices = @transform_0, window_bounds = array<i64: 8, 51>}, {transform_indices = @transform_1, window_bounds = array<i64: 8, 1>}, {transform_indices = @transform_2, window_bounds = array<i64: 8, 128>}]} {
    %c0 = arith.constant 0 : index
    %c0_0 = arith.constant 0 : index
    %0 = vector.load %arg1[%c0, %c0_0] : memref<8x51xf32, #tpu.memory_space<vmem>>, vector<8x51xf32>
    %cst = arith.constant dense<0xFF800000> : vector<8xf32>
    %1 = vector.multi_reduction <maximumf>, %0, %cst [1] : vector<8x51xf32> to vector<8xf32>
    %2 = vector.shape_cast %1 : vector<8xf32> to vector<8x1xf32>
    %3 = vector.broadcast %2 : vector<8x1xf32> to vector<8x51xf32>
    %4 = arith.subf %0, %3 : vector<8x51xf32>
    %5 = math.exp %4 : vector<8x51xf32>
    %cst_1 = arith.constant dense<0.000000e+00> : vector<8xf32>
    %6 = vector.multi_reduction <add>, %5, %cst_1 [1] : vector<8x51xf32> to vector<8xf32>
    %7 = vector.shape_cast %6 : vector<8xf32> to vector<8x1xf32>
    %8 = tpu.reciprocal %7 : vector<8x1xf32> -> vector<8x1xf32>
    %9 = vector.broadcast %8 : vector<8x1xf32> to vector<8x51xf32>
    %10 = arith.mulf %5, %9 : vector<8x51xf32>
    %11 = tpu.iota {dimensions = array<i32: 1>} : vector<8x51xi32>
    %c0_i32 = arith.constant 0 : i32
    %12 = vector.broadcast %c0_i32 : i32 to vector<8x51xi32>
    %13 = arith.cmpi eq, %11, %12 : vector<8x51xi32>
    %cst_2 = arith.constant -1.000000e+00 : f32
    %14 = vector.broadcast %cst_2 : f32 to vector<8x51xf32>
    %15 = arith.select %13, %14, %10 : vector<8x51xi1>, vector<8x51xf32>
    %cst_3 = arith.constant dense<0xFF800000> : vector<8xf32>
    %16 = vector.multi_reduction <maximumf>, %15, %cst_3 [1] : vector<8x51xf32> to vector<8xf32>
    %17 = vector.shape_cast %16 : vector<8xf32> to vector<8x1xf32>
    %18 = vector.broadcast %17 : vector<8x1xf32> to vector<8x51xf32>
    %19 = arith.cmpf oeq, %15, %18 : vector<8x51xf32>
    %c51_i32 = arith.constant 51 : i32
    %20 = vector.broadcast %c51_i32 : i32 to vector<8x51xi32>
    %21 = arith.select %19, %11, %20 : vector<8x51xi1>, vector<8x51xi32>
    %cst_4 = arith.constant dense<2147483647> : vector<8xi32>
    %22 = vector.multi_reduction <minsi>, %21, %cst_4 [1] : vector<8x51xi32> to vector<8xi32>
    %23 = vector.shape_cast %22 : vector<8xi32> to vector<8x1xi32>
    %c0_5 = arith.constant 0 : index
    %c0_6 = arith.constant 0 : index
    %24 = vector.load %arg2[%c0_5, %c0_6] : memref<8x1xf32, #tpu.memory_space<vmem>>, vector<8x1xf32>
    %25 = arith.mulf %17, %24 : vector<8x1xf32>
    %c0_i32_7 = arith.constant 0 : i32
    %26 = arith.sitofp %c0_i32_7 : i32 to f32
    %27 = vector.broadcast %26 : f32 to vector<8x77xf32>
    %28 = tpu.concatenate %10, %27 in 1 : vector<8x51xf32>, vector<8x77xf32> -> vector<8x128xf32>
    %29 = tpu.iota {dimensions = array<i32: 1>} : vector<8x128xi32>
    %c127_i32 = arith.constant 127 : i32
    %30 = vector.broadcast %c127_i32 : i32 to vector<8x128xi32>
    %31 = arith.cmpi eq, %29, %30 : vector<8x128xi32>
    %c126_i32 = arith.constant 126 : i32
    %32 = vector.broadcast %c126_i32 : i32 to vector<8x128xi32>
    %33 = arith.cmpi eq, %29, %32 : vector<8x128xi32>
    %34 = arith.sitofp %23 : vector<8x1xi32> to vector<8x1xf32>
    %35 = vector.shape_cast %34 : vector<8x1xf32> to vector<8x1xf32>
    %36 = vector.broadcast %35 : vector<8x1xf32> to vector<8x128xf32>
    %37 = arith.select %33, %36, %28 : vector<8x128xi1>, vector<8x128xf32>
    %38 = vector.shape_cast %25 : vector<8x1xf32> to vector<8x1xf32>
    %39 = vector.broadcast %38 : vector<8x1xf32> to vector<8x128xf32>
    %40 = arith.select %31, %39, %37 : vector<8x128xi1>, vector<8x128xf32>
    %c0_8 = arith.constant 0 : index
    %c0_9 = arith.constant 0 : index
    %41 = vector.load %arg3[%c0_8, %c0_9] : memref<8x128xf32, #tpu.memory_space<vmem>>, vector<8x128xf32>
    tpu.vector_store %arg3[%c0_8, %c0_9], %40 {strides = array<i32>} : memref<8x128xf32, #tpu.memory_space<vmem>>, vector<8x128xf32>,
    return
  }
  func.func @transform_0(%arg0: i32) -> (i32, i32) {
    %c0_i32 = arith.constant 0 : i32
    %c0_i32_0 = arith.constant 0 : i32
    return %arg0, %c0_i32 : i32, i32
  }
  func.func @transform_1(%arg0: i32) -> (i32, i32) {
    %c0_i32 = arith.constant 0 : i32
    %c0_i32_0 = arith.constant 0 : i32
    return %arg0, %c0_i32 : i32, i32
  }
  func.func @transform_2(%arg0: i32) -> (i32, i32) {
    %c0_i32 = arith.constant 0 : i32
    %c0_i32_0 = arith.constant 0 : i32
    return %arg0, %c0_i32 : i32, i32
  }
}

</mosaic_0001>

<bundles_post_ra>
// kernel: tpu_custom_call.1
= control target key start
LH: loop header
LB: loop body
LE: loop exit
PB: predicated region body
PF: predicated region fallthrough
CT: control target
= control target key end

     0   :  { %7 = vsyncpa [#allocation3], 0  ;;  %s544_s0 = inlined_call_operand.vmem [shape: f32[16,51], index: 0, kind: input, shape index: {}]   ;;  %s545_s1 = inlined_call_operand.vmem [shape: f32[16,1], index: 1, kind: input, shape index: {}]   ;;  %s546_s2 = inlined_call_operand.hbm [shape: f32[16,128], index: 2, kind: output, shape index: {}]  }
   0x1   :  { %9 = vsyncpa [#allocation3 + $0x1], 0  ;;  %s444_s9 = smov 0   ;;  %s446_s10 = smov 0  }
   0x2   :  { %s448_s11 = smov 0   ;;  %s450_s12 = smov 0  }
   0x3 LB: > { %s465_s13 = sadd.s32 4294967295, %s426_s12   ;;  %s307_s14 = sadd.s32 4294967294, %s426_s12   ;;  %s426_s12 = sphi %s450_s12, %s552_s12   ;;  %s422_s11 = sphi %s448_s11, %s551_s11   ;;  %s418_s10 = sphi %s446_s10, %s550_s10   ;;  %s414_s9 = sphi %s444_s9, %s549_s9  }
   0x4   : > { %s469_s15 = sadd.s32 1, %s426_s12   ;;  %s74_s16 = sadd.s32 1, %s422_s11 }
   0x5   : > { %s71_s17 = ssub.s32 %s426_s12, %s469_s15  ;;  %p84_p0 = scmp.ne.s32.totalorder %s422_s11, %s418_s10 }
   0x6   : > { %p72_p1 = scmp.eq.s32.totalorder %s71_s17, 0  ;;  %p85_p2 = scmp.eq.s32.totalorder %s465_s13, 1 }
   0x7   : > { %p90_p3 = scmp.ne.s32.totalorder %s418_s10, %s414_s9  ;;  %p91_p4 = scmp.eq.s32.totalorder %s307_s14, 1 }
   0x8   : > { %s480_s18 = scalar_select %p72_p1, %s422_s11, %s74_s16  }
   0x9   : > { %p482_p5 = por %p85_p2, %p84_p0  ;;  %p486_p6 = por %p91_p4, %p90_p3 }
   0xa   : > { %p310_p7 = scmp.ge.s32.totalorder %s426_s12, 1  ;;  %p123_p8 = scmp.lt.s32.totalorder %s426_s12, 3 }
   0xc   : > { %p124_p9 = pnand %p310_p7, %p123_p8 }
   0xd   : > { %p148_p10 = scmp.lt.s32.totalorder (!%p124_p9), %s465_s13, 1  ;;  %s145_s29 = sand.u32 (!%p124_p9), 1, %s418_s10  }
   0xe   : > { %127 = sbr.rel (%p124_p9) target bundleno = 659 (0x293), region = 28  ;;  %s311_s30 = sshll.u32 (!%p124_p9), %s145_s29, 3 }
   0xf   : > { %s315_s3 = sshll.u32 (!%p124_p9), %s465_s13, 3  ;;  %s147_s7 = scalar_lea.vmem (!%p124_p9), [#allocation2], %s311_s30 }
  0x10   : > { %s231_s6 = scalar_lea.hbm (!%p124_p9), %s546_s2, %s315_s3  ;;  %s233_s8 = sshll.u32 (!%p124_p9), %s147_s7, 4  ;;  %s234_s8 = int_to_ptr.vmem [resolvable:$true] %s233_s8 }
  0x11   : > { %s235_s14 = sshll.u32 (!%p124_p9), %s231_s6, 4  ;;  %s384_s23 = scalar_lea.hbm (!%p124_p9), %s546_s2, 16  ;;  %s236_s14 = int_to_ptr.hbm [resolvable:$true] %s235_s14 }
  0x12   : > { %s378_s16 = sshra.s32 (!%p124_p9), %s236_s14, 4  ;;  %s379_s16 = int_to_ptr.hbm [resolvable:$true] %s378_s16 }
  0x13   : > { %s494_s21 = scalar_select %p148_p10, %s465_s13, 1  ;;  %vm157_vm0 = vcmask 416768   ;;  %v182_v10 = vlaneseq  ;;  %v428_v28 = vmov 0  }
  0x14   : > { %358 = vset.pattern.permute.xlu2 %v428_v28  ;;  %359 = vset.pattern.permute.xlu0 %v428_v28  ;;  %s221_s13 = scalar_lea.sflag [#allocation3], %s145_s29  ;;  %s380_s17 = scalar_lea.hbm %s379_s16, 8 }
  0x15   : > { %s312_s22 = sshll.u32 %s494_s21, 3  ;;  %v183_v15 = vand.u32 127, %v182_v10  ;;  %p381_p11 = scmp.ne.s32.totalorder %s379_s16, %s380_s17 }
  0x16   : > { %s151_s25 = scalar_lea.vmem %s544_s0, %s312_s22  ;;  %s155_s28 = scalar_lea.vmem %s545_s1, %s312_s22 }
  0x17   : > { %v156_v0 = vld [vmem:[%s151_s25] sm:$0xff]  ;;  %vm184_vm5 = vcmp.eq.s32.totalorder %v183_v15, 0  ;;  %vm210_vm8 = vcmp.eq.s32.totalorder %v183_v15, 126  ;;  %vm209_vm9 = vcmp.eq.s32.totalorder %v183_v15, 127  ;;  %p382_p12 = pnand %p381_p11, %p482_p5  ;;  %p385_p0 = scmp.lt.s32.totalorder %s379_s16, %s546_s2 }
  0x18   : > { %v158_v1 = vsel %vm157_vm0, %v156_v0, -inf  ;;  %v206_v33 = vld [vmem:[%s155_s28] sm:$0xff]  ;;  %p386_p1 = scmp.lt.s32.totalorder %s384_s23, %s380_s17 }
  0x19   : > { %159 = vmax.xlane.f32.xlu0 %v158_v1  ;;  %p383_p13 = pneg %p382_p12 }
  0x1a   : > { %p387_p2 = por %p386_p1, %p385_p0 }
  0x1c   : > { %p388_p3 = pnand %p387_p2, %p383_p13 }
  0x8c   : > { %v160_v2 = vpop.xlane.xlu0 %159 }
  0x8d   : > { %v161_v3 = vsub.f32 %v156_v0, %v160_v2 }
  0x8f   : > { %v162_v4 = vmul.f32 1.442695, %v161_v3 }
  0x91   : > { %360 = vpow2.f32 %v162_v4 }
  0x97   : > { %v361_v5 = vpop.eup %360 }
  0x98   : > { %v164_v6 = vsel %vm157_vm0, %v361_v5, 0.0 }
  0x99   : > { %165 = vadd.xlane.f32.xlu0 %v164_v6 }
 0x10c   : > { %v166_v7 = vpop.xlane.xlu0 %165 }
 0x10d   : > { %362 = vrcp.f32 %v166_v7  ;;  %v178_v12 = vand.u32 2147483648, %v166_v7  ;;  %v176_v14 = vand.u32 2147483647, %v166_v7  ;;  %vm172_vm2 = vweird.f32 %v166_v7 }
 0x10f   : > { %v179_v17 = vor.u32 1.1754944e-38, %v178_v12  ;;  %vm177_vm4 = vcmp.eq.f32.partialorder %v176_v14, 8.507059e+37 }
 0x113   : > { %v363_v8 = vpop.eup %362 }
 0x114   : > { %v168_v9 = vmul.f32 %v363_v8, %v166_v7  ;;  %vm173_vm1 = vweird.f32 %v363_v8 }
 0x115   : > { %vm174_vm3 = vmor %vm172_vm2, %vm173_vm1 }
 0x116   : > { %v169_v11 = vsub.f32 1.0, %v168_v9 }
 0x118   : > { %v170_v13 = vmul.f32 %v363_v8, %v169_v11 }
 0x11a   : > { %v171_v16 = vadd.f32 %v363_v8, %v170_v13 }
 0x11c   : > { %v175_v18 = vsel %vm174_vm3, %v363_v8, %v171_v16 }
 0x11d   : > { %v180_v19 = vsel %vm177_vm4, %v179_v17, %v175_v18 }
 0x11e   : > { %v181_v20 = vmul.f32 %v361_v5, %v180_v19 }
 0x120   : > { %v185_v21 = vsel %vm184_vm5, -1.0, %v181_v20  ;;  %v208_v41 = vsel %vm157_vm0, %v181_v20, 0.0 }
 0x121   : > { %v186_v22 = vsel %vm157_vm0, %v185_v21, -inf }
 0x122   : > { %187 = vmax.xlane.f32.xlu1 %v186_v22 }
 0x195   : > { %v188_v23 = vpop.xlane.xlu1 %187 }
 0x196   : > { %vm189_vm6 = vcmp.eq.f32.partialorder %v185_v21, %v188_v23  ;;  %v207_v34 = vmul.f32 %v206_v33, %v188_v23 }
 0x197   : > { %v190_v24 = vsel %vm189_vm6, %v183_v15, 51 }
 0x198   : > { %v191_v25 = vsel %vm157_vm0, %v190_v24, 2147483647 }
 0x199   : > { %v193_v26 = vshra.s32 %v191_v25, 16  ;;  %v192_v29 = vand.u32 65535, %v191_v25 }
 0x19b   : > { %v195_v27 = vcvt.s32.f32 %v193_v26  ;;  %v194_v31 = vcvt.s32.f32 %v192_v29 }
 0x19d   : > { %196 = vmin.xlane.f32.xlu1 %v195_v27 }
 0x210   : > { %v197_v30 = vpop.xlane.xlu1 %196 }
 0x211   : > { %vm198_vm7 = vcmp.eq.f32.partialorder %v195_v27, %v197_v30  ;;  %v203_v35 = vcvt.f32.s32 %v197_v30 }
 0x212   : > { %v199_v32 = vsel %vm198_vm7, %v194_v31, inf }
 0x213   : > { %200 = vmin.xlane.f32.xlu2 %v199_v32  ;;  %v204_v37 = vshll.u32 %v203_v35, 16 }
 0x22b   : > { %215 = vperm.xlu2 %358, %v207_v34  }
 0x286   : > { %v201_v36 = vpop.xlane.xlu2 %200 }
 0x287   : > { %v202_v38 = vcvt.f32.s32 %v201_v36 }
 0x289   : > { %v205_v39 = vadd.s32 %v204_v37, %v202_v38 }
 0x28b   : > { %v211_v40 = vcvt.s32.f32 %v205_v39 }
 0x28d   : > { %v212_v42 = vsel %vm210_vm8, %v211_v40, %v208_v41 }
 0x28e   : > { %v216_v43 = vpop.permute.xlu2 %215 }
 0x28f   : > { %v218_v44 = vsel %vm209_vm9, %v216_v43, %v212_v42 }
 0x290   : > { %219 = vst [vmem:[%s147_s7] sm:$0xff] %v218_v44 }
 0x291   : > { %391 = shalt.err (!%p388_p3)
}
 0x292   : > { %318 = dma.vmem_to_hbm [thread:$0]  (%p482_p5), %s234_s8, 128, %s236_s14, %s221_s13  }
 0x293 PF: > { %p324_p4 = scmp.ge.s32.totalorder %s426_s12, 2  ;;  %s247_s26 = sand.u32 1, %s414_s9  }
 0x294   : > { %s248_s27 = scalar_lea.sflag [#allocation3], %s247_s26 }
 0x295   : > { %p321_p7 = pnand %p324_p4, %p486_p6 }
 0x297   : > { %p322_p8 = pneg %p321_p7 }
 0x299   : > { %409 = dma.done.wait (%p322_p8), %s248_s27, 128  }
 0x29a   : > { %411 = vsyncadd (%p322_p8), %s248_s27, 4294967168  ;;  %p12_p9 = scmp.ge.s32.totalorder %s469_s15, 4   ;;  %s549_s9 = smov %s418_s10 }
 0x29b   : > { %s550_s10 = smov %s422_s11  ;;  %s551_s11 = smov %s480_s18 }
 0x29c   : > { %s552_s12 = smov %s469_s15  ;;  %14 = sbr.rel (!%p12_p9) target bundleno = 3 (0x3), region = 66 }
 0x2a1   :  { %254 = vsyncpa [#allocation3], 1 }
 0x2a2   :  { %256 = vsyncpa [#allocation3 + $0x1], 1 }

</bundles_post_ra>
